<compile_context>
chip_gen: v6e
topology: v6e:2x2x1
jax: 0.10.0
libtpu: 0.0.40
codegen_flags: <defaults>
</compile_context>

<pallas_src>
import numpy as np
import jax
import jax.numpy as jnp
from jax.experimental import pallas as pl
from jax.experimental.pallas import tpu as pltpu


def _fusion_kernel(w_ref, b_ref, c_ref, i_ref, o_ref):
    """o = (W_blockdiag @ mean_hw(i) + b) * c + i   for one packed row-slab.

    Shapes seen by the kernel (R = batches_per_step * C, L = H*W):
      w_ref: (R, R)  block-diagonal 1x1-conv weight (one W per packed batch)
      b_ref: (R, 1)  per-row bias (conv bias tiled across packed batches)
      c_ref: (R, L)  'c' rows for this step
      i_ref: (R, L)  'i' rows for this step
      o_ref: (R, L)
    """
    i_blk = i_ref[...]
    # Spatial mean FIRST: exact f32 lane reduction (XLU), result (R, 1).
    pooled = jnp.mean(i_blk, axis=-1, keepdims=True)
    # Tiny (R x R) @ (R x 1) channel mix.  R is O(C), so even at HIGHEST
    # (exact f32) precision this is negligible work, off the critical path.
    scale = jnp.dot(w_ref[...], pooled,
                    precision=jax.lax.Precision.HIGHEST,
                    preferred_element_type=jnp.float32) + b_ref[...]
    # Single FMA per element; `scale` broadcasts across lanes.
    o_ref[...] = (scale * c_ref[...] + i_blk).astype(o_ref.dtype)


# Target for the double-buffered (c, i, o) working set per grid step.  Safe on
# all of v5e (16 MiB default scoped), v6e (32 MiB) and v7x (32 MiB of 64 MiB).
_VMEM_BUDGET_BYTES = 24 * 1024 * 1024


def _pick_batches_per_step(B, C, L, itemsize):
    """Largest divisor NB of B whose c/i/o double-buffered slabs fit the VMEM
    budget and whose row count NB*C is sublane-legal (multiple of 8, or the
    full B*C extent)."""
    legal = [nb for nb in range(1, B + 1)
             if B % nb == 0 and ((nb * C) % 8 == 0 or nb == B)]
    fitting = [nb for nb in legal
               if 3 * nb * C * L * itemsize * 2 <= _VMEM_BUDGET_BYTES]
    return max(fitting) if fitting else min(legal)


def fusion_forward(c, i, weight, bias):
    """Pallas implementation of Fusion.forward(c, i).

    c, i   : (B, C, H, W)
    weight : (C, C)  1x1-conv weight, weight[co, ci]
    bias   : (C,)    1x1-conv bias
    """
    B, C, H, W = i.shape
    L = H * W
    nb = _pick_batches_per_step(B, C, L, i.dtype.itemsize)
    R = nb * C                      # packed rows per grid step
    steps = B // nb

    # Lane-dense, sublane-dense 2-D views: rows = (batch, channel), cols = H*W.
    # The reshape is contiguous (free) and keeps stores as full-width vst.
    c2 = c.reshape(B * C, L)
    i2 = i.reshape(B * C, L)

    # Block-diagonal weight so `nb` packed batches share one tiny matvec;
    # bias tiled to one entry per packed row.  Built once per call (tiny).
    w_big = jnp.kron(jnp.eye(nb, dtype=weight.dtype), weight)   # (R, R)
    b_big = jnp.tile(bias, nb).reshape(R, 1)                    # (R, 1)

    slab = pl.BlockSpec((R, L), lambda s: (s, 0))
    out2 = pl.pallas_call(
        _fusion_kernel,
        out_shape=jax.ShapeDtypeStruct((B * C, L), i.dtype),
        grid=(steps,),
        in_specs=[
            pl.BlockSpec((R, R), lambda s: (0, 0)),   # weight: resident
            pl.BlockSpec((R, 1), lambda s: (0, 0)),   # bias:   resident
            slab,                                     # c rows
            slab,                                     # i rows
        ],
        out_specs=slab,
        compiler_params=pltpu.CompilerParams(
            dimension_semantics=("parallel",),
            vmem_limit_bytes=32 * 1024 * 1024,
        ),
    )(w_big, b_big, c2, i2)
    return out2.reshape(B, C, H, W)


fusion_forward_jit = jax.jit(fusion_forward)


if __name__ == "__main__":
    B, C, H, W = 2, 4, 16, 16

    key = jax.random.PRNGKey(0)
    k1, k2, k3, k4 = jax.random.split(key, 4)
    c_in = jax.random.normal(k1, (B, C, H, W), jnp.float32)
    i_in = jax.random.normal(k2, (B, C, H, W), jnp.float32)
    weight = 0.1 * jax.random.normal(k3, (C, C), jnp.float32)  # conv1x1 w[co, ci]
    bias = 0.1 * jax.random.normal(k4, (C,), jnp.float32)

    out = fusion_forward_jit(c_in, i_in, weight, bias)
    jax.block_until_ready(out)

    # Pure-JAX reference: sca(i) * c + i (exact f32, elementwise).
    pooled = jnp.mean(i_in, axis=(2, 3))                                      # (B, C)
    scale = jnp.sum(pooled[:, None, :] * weight[None, :, :], axis=-1) + bias  # (B, C)
    ref = scale[:, :, None, None] * c_in + i_in
    np.testing.assert_allclose(np.asarray(out), np.asarray(ref),
                               rtol=1e-5, atol=1e-5)

    print("KERNEL_OK")
</pallas_src>

<mosaic_0001>
module attributes {stable_mosaic.version = 11 : i64} {
  func.func @_fusion_kernel(%arg0: i32, %arg1: memref<8x8xf32, #tpu.memory_space<vmem>>, %arg2: memref<8x1xf32, #tpu.memory_space<vmem>>, %arg3: memref<8x256xf32, #tpu.memory_space<vmem>>, %arg4: memref<8x256xf32, #tpu.memory_space<vmem>>, %arg5: memref<8x256xf32, #tpu.memory_space<vmem>>) attributes {dimension_semantics = [#tpu.dimension_semantics<parallel>], iteration_bounds = array<i64: 1>, scalar_prefetch = 0 : i64, scratch_operands = 0 : i64, tpu.core_type = #tpu.core_type<tc>, window_params = [{pipeline_mode = #tpu.pipeline_mode<synchronous>, transform_indices = @transform_0, window_bounds = array<i64: 8, 8>}, {pipeline_mode = #tpu.pipeline_mode<synchronous>, transform_indices = @transform_1, window_bounds = array<i64: 8, 1>}, {transform_indices = @transform_2, window_bounds = array<i64: 8, 256>}, {transform_indices = @transform_3, window_bounds = array<i64: 8, 256>}, {transform_indices = @transform_4, window_bounds = array<i64: 8, 256>}]} {
    %c0 = arith.constant 0 : index
    %c0_0 = arith.constant 0 : index
    %0 = vector.load %arg4[%c0, %c0_0] : memref<8x256xf32, #tpu.memory_space<vmem>>, vector<8x256xf32>
    %cst = arith.constant dense<0.000000e+00> : vector<8xf32>
    %1 = vector.multi_reduction <add>, %0, %cst [1] : vector<8x256xf32> to vector<8xf32>
    %2 = vector.shape_cast %1 : vector<8xf32> to vector<8x1xf32>
    %cst_1 = arith.constant 2.560000e+02 : f32
    %3 = vector.broadcast %cst_1 : f32 to vector<8x1xf32>
    %4 = arith.divf %2, %3 : vector<8x1xf32>
    %c0_2 = arith.constant 0 : index
    %c0_3 = arith.constant 0 : index
    %5 = vector.load %arg1[%c0_2, %c0_3] : memref<8x8xf32, #tpu.memory_space<vmem>>, vector<8x8xf32>
    %cst_4 = arith.constant dense<0.000000e+00> : vector<8x1xf32>
    %6 = tpu.matmul %5, %4, %cst_4 {dimension_numbers = #tpu.dot_dimension_numbers<[1], [0], [0], [1], [0, 0, 1, 1], [], []>, precision = #tpu.contract_precision<fp32>} : vector<8x8xf32>, vector<8x1xf32>, vector<8x1xf32> -> vector<8x1xf32>
    %c0_5 = arith.constant 0 : index
    %c0_6 = arith.constant 0 : index
    %7 = vector.load %arg2[%c0_5, %c0_6] : memref<8x1xf32, #tpu.memory_space<vmem>>, vector<8x1xf32>
    %8 = arith.addf %6, %7 : vector<8x1xf32>
    %c0_7 = arith.constant 0 : index
    %c0_8 = arith.constant 0 : index
    %9 = vector.load %arg3[%c0_7, %c0_8] : memref<8x256xf32, #tpu.memory_space<vmem>>, vector<8x256xf32>
    %10 = vector.broadcast %8 : vector<8x1xf32> to vector<8x256xf32>
    %11 = arith.mulf %10, %9 : vector<8x256xf32>
    %12 = arith.addf %11, %0 : vector<8x256xf32>
    %c0_9 = arith.constant 0 : index
    %c0_10 = arith.constant 0 : index
    %13 = vector.load %arg5[%c0_9, %c0_10] : memref<8x256xf32, #tpu.memory_space<vmem>>, vector<8x256xf32>
    tpu.vector_store %arg5[%c0_9, %c0_10], %12 {strides = array<i32>} : memref<8x256xf32, #tpu.memory_space<vmem>>, vector<8x256xf32>,
    return
  }
  func.func @transform_0(%arg0: i32) -> (i32, i32) {
    %c0_i32 = arith.constant 0 : i32
    %c0_i32_0 = arith.constant 0 : i32
    %c0_i32_1 = arith.constant 0 : i32
    return %c0_i32, %c0_i32_0 : i32, i32
  }
  func.func @transform_1(%arg0: i32) -> (i32, i32) {
    %c0_i32 = arith.constant 0 : i32
    %c0_i32_0 = arith.constant 0 : i32
    %c0_i32_1 = arith.constant 0 : i32
    return %c0_i32, %c0_i32_0 : i32, i32
  }
  func.func @transform_2(%arg0: i32) -> (i32, i32) {
    %c0_i32 = arith.constant 0 : i32
    %c0_i32_0 = arith.constant 0 : i32
    return %arg0, %c0_i32 : i32, i32
  }
  func.func @transform_3(%arg0: i32) -> (i32, i32) {
    %c0_i32 = arith.constant 0 : i32
    %c0_i32_0 = arith.constant 0 : i32
    return %arg0, %c0_i32 : i32, i32
  }
  func.func @transform_4(%arg0: i32) -> (i32, i32) {
    %c0_i32 = arith.constant 0 : i32
    %c0_i32_0 = arith.constant 0 : i32
    return %arg0, %c0_i32 : i32, i32
  }
}

</mosaic_0001>

<bundles_post_ra>
// kernel: tile.0
= control target key start
LH: loop header
LB: loop body
LE: loop exit
PB: predicated region body
PF: predicated region fallthrough
CT: control target
= control target key end

     0   :  { %s35_s8 = smov 125   ;;  %vm8_vm0 = vcmask 7168   ;;  %s36_s11 = smov 126   ;;  %s62_s0 = inlined_call_operand.vmem [shape: f32[2,4], index: 0, kind: input, shape index: {}]   ;;  %s63_s1 = inlined_call_operand.vmem [shape: f32[8,1], index: 1, kind: output, shape index: {}]  }
   0x1   :  { %v5_v0 = vld [vmem:[%s62_s0] sm:$0x3]  ;;  %s34_s0 = smov 127  }
   0x2   :  { %6 = vst [vmem:[#allocation0] sm:$0x3] %v5_v0 }
   0x9   :  { %v10_v1 = vld [vmem:[#allocation0] sm:$0x3]  }
   0xa   :  { %v22_v2 = vld [vmem:[#allocation0] sm:$0x3]   ;;  %11 = vrot.lane.b32.xlu0 %v10_v1, %s34_s0 }
   0xb   :  { %23 = vrot.lane.b32.xlu1 %v22_v2, %s35_s8  ;;  %v7_v3 = vld [vmem:[#allocation0] sm:$0x3]  }
   0xc   :  { %v16_v4 = vld [vmem:[#allocation0] sm:$0x3]   ;;  %9 = vst.msk [vmem:[%s63_s1] ss:$4 sm:$0x3] %vm8_vm0, %v7_v3  }
   0xe   :  { %17 = vrot.lane.b32.xlu0 %v16_v4, %s36_s11 }
  0x7c   :  { %v12_v5 = vpop.permute.xlu0 %11  }
  0x7d   :  { %v24_v6 = vpop.permute.xlu1 %23   ;;  %28 = vst.msk [vmem:[%s63_s1 + $0x1] ss:$4 sm:$0x3] %vm8_vm0, %v12_v5  }
  0x7e   :  { %30 = vst.msk [vmem:[%s63_s1 + $0x3] ss:$4 sm:$0x3] %vm8_vm0, %v24_v6  }
  0x80   :  { %v18_v7 = vpop.permute.xlu0 %17  }
  0x81   :  { %29 = vst.msk [vmem:[%s63_s1 + $0x2] ss:$4 sm:$0x3] %vm8_vm0, %v18_v7  }

// kernel: tile.8
= control target key start
LH: loop header
LB: loop body
LE: loop exit
PB: predicated region body
PF: predicated region fallthrough
CT: control target
= control target key end

     0   :  { %s22_s0 = inlined_call_operand.vmem [shape: f32[4], index: 0, kind: input, shape index: {}]   ;;  %s23_s1 = inlined_call_operand.vmem [shape: f32[2,4], index: 1, kind: output, shape index: {}]  }
   0x1   :  { %v4_v0 = vld [vmem:[%s22_s0] ss:$0 sm:$0xff] }
   0x2   :  { %5 = vst [vmem:[%s23_s1] sm:$0x3] %v4_v0 }

</bundles_post_ra>
